<compile_context>
chip_gen: v7x
topology: tpu7x:2x2x1
jax: 0.10.0
libtpu: 0.0.40
codegen_flags: <defaults>
</compile_context>

<pallas_src>
import jax
import jax.numpy as jnp
from jax.experimental import pallas as pl
from jax.experimental.pallas import tpu as pltpu

IN_F = 3      # linear_1 / linear_2 in_features
HID_F = 3     # linear_1 / linear_2 out_features
CAT_F = 6     # linear_3 in_features
OUT_F = 1     # linear_3 out_features


def samplenet_kernel(x_ref, w_ref, b_ref, o_ref):
    # x_ref: (TILE_B, IN_F)   w_ref: (1, IN_F)   b_ref: (1, OUT_F)
    x = x_ref[...]
    w = w_ref[...]                                   # broadcast over sublanes
    z = jnp.sum(x * w, axis=-1, keepdims=True) + b_ref[...]   # (TILE_B, 1)
    o_ref[...] = jnp.maximum(z, 0.0)                 # ReLU


def prepare_params(params):
    """One-time parameter preprocessing, hoisted out of the per-call path.

    relu(cat(x@W1.T+b1, x@W2.T+b2) @ W3.T + b3) == relu(x @ W_eff + b_eff)
    with W_eff = W1.T @ W3[:, :3].T + W2.T @ W3[:, 3:].T  (shape 3x1)
    and  b_eff = b1 @ W3[:, :3].T + b2 @ W3[:, 3:].T + b3 (shape 1).
    """
    w1t = jnp.asarray(params["w1"], jnp.float32).T          # (3, 3)
    w2t = jnp.asarray(params["w2"], jnp.float32).T          # (3, 3)
    w3t = jnp.asarray(params["w3"], jnp.float32).T          # (6, 1)
    w3a, w3b = w3t[:HID_F], w3t[HID_F:]                     # (3, 1) each
    w_eff = w1t @ w3a + w2t @ w3b                           # (3, 1)
    b_eff = (jnp.asarray(params["b1"], jnp.float32) @ w3a[:, 0]
             + jnp.asarray(params["b2"], jnp.float32) @ w3b[:, 0]
             + jnp.asarray(params["b3"], jnp.float32))      # (1,)
    return {
        "w_row": jnp.asarray(w_eff.T, jnp.float32),         # (1, 3)
        "b": jnp.asarray(b_eff, jnp.float32).reshape(1, OUT_F),  # (1, 1)
    }


def samplenet_forward(x, prepared, *, tile_b=512):
    """x: (B, 3) float32 -> (B, 1) float32."""
    B = x.shape[0]
    x = jnp.asarray(x, jnp.float32)
    # Batch tile: multiple of 8 (sublane rule); lane dims (3 / 1) equal the
    # full array dims so no 128-lane padding is required anywhere.
    tile_b = min(tile_b, ((B + 7) // 8) * 8)
    grid = (pl.cdiv(B, tile_b),)

    return pl.pallas_call(
        samplenet_kernel,
        out_shape=jax.ShapeDtypeStruct((B, OUT_F), jnp.float32),
        grid=grid,
        in_specs=[
            pl.BlockSpec((tile_b, IN_F), lambda i: (i, 0)),   # x, tiled on batch
            pl.BlockSpec((1, IN_F), lambda i: (0, 0)),        # W_eff row (const)
            pl.BlockSpec((1, OUT_F), lambda i: (0, 0)),       # b_eff     (const)
        ],
        out_specs=pl.BlockSpec((tile_b, OUT_F), lambda i: (i, 0)),
        compiler_params=pltpu.CompilerParams(
            dimension_semantics=("parallel",)),               # v7x: 2 TCs split batch
    )(x, prepared["w_row"], prepared["b"])


def init_params(key):
    """Deterministic synthetic parameters matching SampleNet.__init__ shapes."""
    ks = jax.random.split(key, 6)

    def u(k, shape, fan_in):
        bound = 1.0 / jnp.sqrt(fan_in)
        return jax.random.uniform(k, shape, jnp.float32, -bound, bound)

    return {
        "w1": u(ks[0], (HID_F, IN_F), IN_F),   # linear_1.weight  (out, in)
        "b1": u(ks[1], (HID_F,), IN_F),        # linear_1.bias
        "w2": u(ks[2], (HID_F, IN_F), IN_F),   # linear_2.weight
        "b2": u(ks[3], (HID_F,), IN_F),        # linear_2.bias
        "w3": u(ks[4], (OUT_F, CAT_F), CAT_F), # linear_3.weight
        "b3": u(ks[5], (OUT_F,), CAT_F),       # linear_3.bias
    }


def samplenet_reference(x, params):
    """Pure-JAX reference reproducing the PyTorch forward exactly."""
    h1 = x @ params["w1"].T + params["b1"]
    h2 = x @ params["w2"].T + params["b2"]
    z = jnp.concatenate([h1, h2], axis=1)
    z = z @ params["w3"].T + params["b3"]
    return jnp.maximum(z, 0.0)


if __name__ == "__main__":
    key = jax.random.PRNGKey(0)
    k_x, k_p = jax.random.split(key)

    B = 16
    x = jax.random.normal(k_x, (B, IN_F), jnp.float32)
    params = init_params(k_p)
    prepared = prepare_params(params)          # one-time, outside the hot path

    # Small tile here just to exercise a multi-step grid (grid=(2,)); the
    # default tile_b=512 is what you'd use at real batch sizes.
    out = samplenet_forward(x, prepared, tile_b=8)
    out = jax.block_until_ready(out)

    ref = samplenet_reference(x, params)
    assert out.shape == (B, OUT_F), out.shape
    assert jnp.allclose(out, ref, atol=1e-5, rtol=1e-5), (out, ref)

    print("KERNEL_OK")
</pallas_src>

<mosaic_0001>
module attributes {stable_mosaic.version = 11 : i64} {
  func.func @samplenet_kernel(%arg0: i32, %arg1: memref<8x3xf32, #tpu.memory_space<vmem>>, %arg2: memref<1x3xf32, #tpu.memory_space<vmem>>, %arg3: memref<1x1xf32, #tpu.memory_space<vmem>>, %arg4: memref<8x1xf32, #tpu.memory_space<vmem>>) attributes {dimension_semantics = [#tpu.dimension_semantics<parallel>], iteration_bounds = array<i64: 2>, scalar_prefetch = 0 : i64, scratch_operands = 0 : i64, tpu.core_type = #tpu.core_type<tc>, window_params = [{transform_indices = @transform_0, window_bounds = array<i64: 8, 3>}, {pipeline_mode = #tpu.pipeline_mode<synchronous>, transform_indices = @transform_1, window_bounds = array<i64: 1, 3>}, {pipeline_mode = #tpu.pipeline_mode<synchronous>, transform_indices = @transform_2, window_bounds = array<i64: 1, 1>}, {transform_indices = @transform_3, window_bounds = array<i64: 8, 1>}]} {
    %c0 = arith.constant 0 : index
    %c0_0 = arith.constant 0 : index
    %0 = vector.load %arg1[%c0, %c0_0] : memref<8x3xf32, #tpu.memory_space<vmem>>, vector<8x3xf32>
    %c0_1 = arith.constant 0 : index
    %c0_2 = arith.constant 0 : index
    %1 = vector.load %arg2[%c0_1, %c0_2] : memref<1x3xf32, #tpu.memory_space<vmem>>, vector<1x3xf32>
    %2 = vector.broadcast %1 : vector<1x3xf32> to vector<8x3xf32>
    %3 = arith.mulf %0, %2 : vector<8x3xf32>
    %cst = arith.constant dense<0.000000e+00> : vector<8xf32>
    %4 = vector.multi_reduction <add>, %3, %cst [1] : vector<8x3xf32> to vector<8xf32>
    %5 = vector.shape_cast %4 : vector<8xf32> to vector<8x1xf32>
    %c0_3 = arith.constant 0 : index
    %c0_4 = arith.constant 0 : index
    %6 = vector.load %arg3[%c0_3, %c0_4] : memref<1x1xf32, #tpu.memory_space<vmem>>, vector<1x1xf32>
    %7 = vector.broadcast %6 : vector<1x1xf32> to vector<8x1xf32>
    %8 = arith.addf %5, %7 : vector<8x1xf32>
    %cst_5 = arith.constant 0.000000e+00 : f32
    %9 = vector.broadcast %cst_5 : f32 to vector<8x1xf32>
    %10 = arith.maximumf %8, %9 : vector<8x1xf32>
    %c0_6 = arith.constant 0 : index
    %c0_7 = arith.constant 0 : index
    %11 = vector.load %arg4[%c0_6, %c0_7] : memref<8x1xf32, #tpu.memory_space<vmem>>, vector<8x1xf32>
    tpu.vector_store %arg4[%c0_6, %c0_7], %10 {strides = array<i32>} : memref<8x1xf32, #tpu.memory_space<vmem>>, vector<8x1xf32>,
    return
  }
  func.func @transform_0(%arg0: i32) -> (i32, i32) {
    %c0_i32 = arith.constant 0 : i32
    %c0_i32_0 = arith.constant 0 : i32
    return %arg0, %c0_i32 : i32, i32
  }
  func.func @transform_1(%arg0: i32) -> (i32, i32) {
    %c0_i32 = arith.constant 0 : i32
    %c0_i32_0 = arith.constant 0 : i32
    %c0_i32_1 = arith.constant 0 : i32
    return %c0_i32, %c0_i32_0 : i32, i32
  }
  func.func @transform_2(%arg0: i32) -> (i32, i32) {
    %c0_i32 = arith.constant 0 : i32
    %c0_i32_0 = arith.constant 0 : i32
    %c0_i32_1 = arith.constant 0 : i32
    return %c0_i32, %c0_i32_0 : i32, i32
  }
  func.func @transform_3(%arg0: i32) -> (i32, i32) {
    %c0_i32 = arith.constant 0 : i32
    %c0_i32_0 = arith.constant 0 : i32
    return %arg0, %c0_i32 : i32, i32
  }
}

</mosaic_0001>

<bundles_post_ra>
// kernel: tpu_custom_call.1
= control target key start
LH: loop header
LB: loop body
LE: loop exit
PB: predicated region body
PF: predicated region fallthrough
CT: control target
= control target key end

     0   :  { %s295_s14 = smov 0   ;;  %s309_s0 = inlined_call_operand.vmem [shape: f32[16,3], index: 0, kind: input, shape index: {}]   ;;  %s310_s1 = inlined_call_operand.vmem [shape: f32[1,3], index: 1, kind: input, shape index: {}]   ;;  %s311_s2 = inlined_call_operand.<no memory space> [shape: f32[1,1], index: 2, kind: input, shape index: {}]   ;;  %s312_s3 = inlined_call_operand.vmem [shape: f32[16,1], index: 3, kind: output, shape index: {}]  }
   0x1   :  { %v8_v0 = vstv %s311_s2 }
   0x2   :  { %9 = vst [vmem:[#allocation2] sm:$0x1] %v8_v0 }
   0x3 LB: > { %s245_s15 = sadd.s32 4294967295, %s270_s14   ;;  %p249_p0 = scmp.ge.s32.totalorder %s270_s14, 1  ;;  %s270_s14 = sphi %s295_s14, %s15_s14  }
   0x4   : > { %p138_p1 = scmp.lt.s32.totalorder %s270_s14, 3 }
   0x6   : > { %p139_p2 = pnand %p249_p0, %p138_p1 }
   0x7   : > { %p160_p3 = scmp.lt.s32.totalorder (!%p139_p2), %s245_s15, 1  ;;  %v252_v1 = vld [vmem:[%s310_s1] ss:$0 sm:$0xff] (!%p139_p2)  ;;  %vm177_vm0 = vcmask (!%p139_p2), 23552   ;;  %vm190_vm1 = vcmask (!%p139_p2), 7168  }
   0x8   : > { %142 = sbr.rel (%p139_p2) target bundleno = 169 (0xa9), region = 32 }
   0x9   : > { %v253_v5 = vld [vmem:[#allocation2] ss:$0 sm:$0xff] (!%p139_p2) }
   0xf   : > { %s314_s15 = smov (!%p160_p3, %s245_s15), 1 }
  0x10   : > { %s250_s16 = sshll.u32 %s314_s15, 3 }
  0x11   : > { %s163_s20 = scalar_lea.vmem %s309_s0, %s250_s16  ;;  %s167_s23 = scalar_lea.vmem %s312_s3, %s250_s16 }
  0x12   : > { %v168_v2 = vld [vmem:[%s163_s20] sm:$0xff] }
  0x13   : > { %v176_v3 = vmul.f32 %v252_v1, %v168_v2 }
  0x15   : > { %v178_v4 = vsel %vm177_vm0, %v176_v3, 0.0 }
  0x16   : > { %179 = vadd.xlane.f32.xlu0 %v178_v4 }
  0xa3   : > { %v180_v6 = vpop.xlane.xlu0 %179 }
  0xa4   : > { %v188_v7 = vadd.f32 %v253_v5, %v180_v6 }
  0xa6   : > { %v189_v8 = vmax.f32 %v188_v7, 0.0 }
  0xa8   : > { %191 = vst.msk [vmem:[%s167_s23] sm:$0xff] %vm190_vm1, %v189_v8 }
  0xa9 PF: > { %s15_s14 = sadd.s32 1, %s270_s14  }
  0xaa   : > { %p12_p4 = scmp.ge.s32.totalorder %s15_s14, 4  }
  0xac   :  { %14 = sbr.rel (!%p12_p4) target bundleno = 3 (0x3), region = 62 }

</bundles_post_ra>
